<compile_context>
chip_gen: v7x
topology: tpu7x:2x2x1
jax: 0.10.0
libtpu: 0.0.40
codegen_flags: <defaults>
</compile_context>

<pallas_src>
import jax
import jax.numpy as jnp
from jax.experimental import pallas as pl
from jax.experimental.pallas import tpu as pltpu


def _rgc_kernel(adj_ref, xw_ref, bias_ref, out_ref):
    """grid = (cdiv(N, tm), P // tp); axis 1 (predicate chunks) is the reduction.

    Block shapes:
      adj_ref  : (tp, tm, N)     stored dtype of A (cast to compute dtype here)
      xw_ref   : (tp, N, H_pad)  compute dtype     XW[p] = vertex @ V_p
      bias_ref : (1, H_pad)      f32               resident
      out_ref  : (tm, H_pad)     f32               resident across the reduction
    """
    pc = pl.program_id(1)

    @pl.when(pc == 0)
    def _():
        # initialise the resident output tile with the (padded) bias
        out_ref[...] = jnp.broadcast_to(bias_ref[...], out_ref.shape)

    tp = adj_ref.shape[0]
    cdt = xw_ref.dtype
    # acc += A[p] @ XW[p]  (MXU: K = N, full-lane RHS, f32 accumulation)
    acc = jnp.dot(adj_ref[0].astype(cdt), xw_ref[0],
                  preferred_element_type=jnp.float32)
    for j in range(1, tp):                                  # tp <= 8, unrolled
        acc += jnp.dot(adj_ref[j].astype(cdt), xw_ref[j],
                       preferred_element_type=jnp.float32)
    out_ref[...] += acc                  # single RMW of the out tile per step


def _round_up(x, m):
    return ((x + m - 1) // m) * m


def _vmem_capacity_bytes():
    """Per-generation VMEM capacity; conservative fallback (v7x per-TC)."""
    try:
        return int(pltpu.get_tpu_info().vmem_capacity_bytes)
    except Exception:
        return 64 * 1024 * 1024


def _choose_tiles(N, P, H_pad, a_itemsize, xw_itemsize, budget_bytes):
    """Pick (tm, tp) so the full double-buffered footprint fits the budget."""

    def footprint(tp_, tm_):
        a_blk = tp_ * tm_ * N * a_itemsize          # A chunk
        xw_blk = tp_ * N * H_pad * xw_itemsize      # XW chunk
        out_blk = tm_ * H_pad * 4                   # resident f32 out tile
        bias_blk = H_pad * 4
        return 2 * (a_blk + xw_blk + out_blk + bias_blk)

    # ---- row tile tm (multiple of 8, or the full dim for tiny N) -----------
    if N < 8:
        tm = N
    else:
        tm = max(8, min(512, (N // 8) * 8))
        # guarantee >= 2 row tiles so the "parallel" axis feeds both v7x TCs
        if pl.cdiv(N, tm) < 2:
            half = _round_up(pl.cdiv(N, 2), 8)
            if half < N:
                tm = half
        # shrink until the (tp=1) footprint fits the VMEM budget
        while footprint(1, tm) > budget_bytes and tm > 8:
            tm = max(8, _round_up(tm // 2, 8))

    # ---- predicate chunk tp: largest divisor of P (capped) that still fits --
    tp = 1
    for t in range(1, min(P, 8) + 1):
        if P % t == 0 and footprint(t, tm) <= budget_bytes:
            tp = t
    return tm, tp


def rgc_layer_forward(vertex, A, W, W_comp, bias, *, num_base,
                      compute_dtype=jnp.bfloat16):
    """vertex: (N, D); A: (P, N, N); W: (D*num_base, H) or (D*P, H);
    W_comp: (P, num_base) or None; bias: (H,).  Returns (N, H) f32.

    A is streamed at its stored dtype and cast to `compute_dtype` inside the
    kernel; for best HBM efficiency keep A persistently in bf16 (or int8/fp8)
    upstream rather than converting per call."""
    P, N, _ = A.shape
    _, D = vertex.shape
    H = W.shape[1]
    hp = jax.lax.Precision.HIGHEST

    # ---- parameter glue (tiny; identical math to the PyTorch module) -------
    if num_base > 0:
        # torch.matmul(W_comp, W.reshape(B,D,H).permute(1,0,2)) -> (D,P,H)
        w3 = jnp.transpose(W.reshape(num_base, D, H), (1, 0, 2))      # (D,B,H)
        v_flat = jnp.einsum("pb,dbh->dph", W_comp, w3,
                            precision=hp).reshape(D * P, H)
    else:
        v_flat = W                                                    # (D*P,H)

    # ---- exact reassociation: precompute XW[p] = vertex @ V_p --------------
    # V_p = v_flat[p*D:(p+1)*D, :]  (the p-th K-slice of `supports @ V`).
    v_blocks = v_flat.reshape(P, D, H).astype(jnp.float32)            # (P,D,H)
    xw = jnp.einsum("nd,pdh->pnh", vertex.astype(jnp.float32), v_blocks,
                    precision=hp)                                     # (P,N,H)

    # ---- lane-dense output: pad H up to a multiple of 128 -------------------
    H_pad = _round_up(H, 128)
    xw_pad = jnp.pad(xw, ((0, 0), (0, 0), (0, H_pad - H))).astype(compute_dtype)
    b_pad = jnp.pad(bias.astype(jnp.float32).reshape(1, H),
                    ((0, 0), (0, H_pad - H)))

    # ---- per-generation VMEM budget & tile choice ---------------------------
    cap = min(_vmem_capacity_bytes(), 128 * 1024 * 1024)
    vmem_limit = min(int(cap * 0.85), 100 * 1024 * 1024)
    budget = int(vmem_limit * 0.8)
    tm, tp = _choose_tiles(N, P, H_pad,
                           jnp.dtype(A.dtype).itemsize,
                           jnp.dtype(compute_dtype).itemsize,
                           budget)
    grid = (pl.cdiv(N, tm), P // tp)          # reduction (predicate) axis last

    grid_spec = pltpu.PrefetchScalarGridSpec(
        num_scalar_prefetch=0,
        grid=grid,
        in_specs=[
            pl.BlockSpec((tp, tm, N), lambda i, pc: (pc, i, 0)),     # A chunk
            pl.BlockSpec((tp, N, H_pad), lambda i, pc: (pc, 0, 0)),  # XW chunk
            pl.BlockSpec((1, H_pad), lambda i, pc: (0, 0)),          # bias
        ],
        out_specs=pl.BlockSpec((tm, H_pad), lambda i, pc: (i, 0)),   # resident
    )

    out_pad = pl.pallas_call(
        _rgc_kernel,
        out_shape=jax.ShapeDtypeStruct((N, H_pad), jnp.float32),
        grid_spec=grid_spec,
        compiler_params=pltpu.CompilerParams(
            dimension_semantics=("parallel", "arbitrary"),
            vmem_limit_bytes=vmem_limit),
    )(A, xw_pad, b_pad)
    return out_pad[:, :H]


def rgc_layer_reference(vertex, A, W, W_comp, bias, *, num_base):
    """Pure-JAX transcription of RGCLayer.forward (featureless=False)."""
    P = A.shape[0]
    D = vertex.shape[1]
    H = W.shape[1]
    hp = jax.lax.Precision.HIGHEST
    supports = jnp.concatenate(
        [jnp.matmul(A[i], vertex, precision=hp) for i in range(P)], axis=1)
    if num_base > 0:
        w3 = jnp.transpose(W.reshape(num_base, D, H), (1, 0, 2))
        V = jnp.einsum("pb,dbh->dph", W_comp, w3,
                       precision=hp).reshape(D * P, H)
        out = jnp.matmul(supports, V, precision=hp)
    else:
        out = jnp.matmul(supports, W, precision=hp)
    return out + bias


def _xavier_uniform(key, shape, dtype=jnp.float32):
    # matches torch.nn.init.xavier_uniform_ bound for a 2-D tensor
    fan_out, fan_in = shape[0], shape[1]
    bound = (6.0 / (fan_in + fan_out)) ** 0.5
    return jax.random.uniform(key, shape, dtype, minval=-bound, maxval=bound)


if __name__ == "__main__":
    # small shapes consistent with the module
    N = 16            # nodes
    input_dim = 16    # D
    h_dim = 32        # H
    num_predicates = 4
    num_base = 2

    key = jax.random.PRNGKey(0)
    k_v, k_a, k_w, k_wc = jax.random.split(key, 4)

    vertex = jax.random.normal(k_v, (N, input_dim), jnp.float32)
    A = jax.random.normal(k_a, (num_predicates, N, N), jnp.float32)

    # deterministic parameter init (module __init__ / reset_parameters)
    W = _xavier_uniform(k_w, (input_dim * num_base, h_dim))
    W_comp = _xavier_uniform(k_wc, (num_predicates, num_base))
    B = jnp.zeros((h_dim,), jnp.float32)

    ref = rgc_layer_reference(vertex, A, W, W_comp, B, num_base=num_base)

    # 1) exactness check: f32 compute path of the same kernel (only matmul
    #    associativity differs from the reference)
    out_f32 = rgc_layer_forward(vertex, A, W, W_comp, B, num_base=num_base,
                                compute_dtype=jnp.float32)
    out_f32 = jax.block_until_ready(out_f32)
    assert out_f32.shape == (N, h_dim)
    assert jnp.allclose(out_f32, ref, atol=1e-3, rtol=1e-3), "f32 mismatch"

    # 2) num_base == 0 path (W shape (D*P, H)), f32 compute
    W0 = _xavier_uniform(k_w, (input_dim * num_predicates, h_dim))
    ref0 = rgc_layer_reference(vertex, A, W0, None, B, num_base=0)
    out0 = rgc_layer_forward(vertex, A, W0, None, B, num_base=0,
                             compute_dtype=jnp.float32)
    out0 = jax.block_until_ready(out0)
    assert out0.shape == (N, h_dim)
    assert jnp.allclose(out0, ref0, atol=1e-3, rtol=1e-3), "num_base=0 mismatch"

    # 3) default fast path: bf16 in-kernel compute, f32 accumulation
    out = rgc_layer_forward(vertex, A, W, W_comp, B, num_base=num_base)
    out = jax.block_until_ready(out)
    assert out.shape == (N, h_dim)
    assert jnp.allclose(out, ref, atol=2e-1, rtol=2e-2), "bf16 mismatch"

    print("KERNEL_OK")
</pallas_src>

<mosaic_0001>
module attributes {stable_mosaic.version = 11 : i64} {
  func.func @_rgc_kernel(%arg0: i32, %arg1: i32, %arg2: memref<4x8x16xf32, #tpu.memory_space<vmem>>, %arg3: memref<4x16x128xf32, #tpu.memory_space<vmem>>, %arg4: memref<1x128xf32, #tpu.memory_space<vmem>>, %arg5: memref<8x128xf32, #tpu.memory_space<vmem>>) attributes {dimension_semantics = [#tpu.dimension_semantics<parallel>, #tpu.dimension_semantics<arbitrary>], iteration_bounds = array<i64: 2, 1>, scalar_prefetch = 0 : i64, scratch_operands = 0 : i64, tpu.core_type = #tpu.core_type<tc>, window_params = [{transform_indices = @transform_0, window_bounds = array<i64: 4, 8, 16>}, {transform_indices = @transform_1, window_bounds = array<i64: 4, 16, 128>}, {pipeline_mode = #tpu.pipeline_mode<synchronous>, transform_indices = @transform_2, window_bounds = array<i64: 1, 128>}, {transform_indices = @transform_3, window_bounds = array<i64: 8, 128>}]} {
    %c0_i32 = arith.constant 0 : i32
    %0 = arith.cmpi eq, %arg1, %c0_i32 : i32
    %1 = arith.extui %0 : i1 to i32
    %c0_i32_0 = arith.constant 0 : i32
    %2 = arith.cmpi ne, %1, %c0_i32_0 : i32
    scf.if %2 {
      %c0_28 = arith.constant 0 : index
      %c0_29 = arith.constant 0 : index
      %29 = vector.load %arg4[%c0_28, %c0_29] : memref<1x128xf32, #tpu.memory_space<vmem>>, vector<1x128xf32>
      %30 = vector.shape_cast %29 : vector<1x128xf32> to vector<1x128xf32>
      %31 = vector.broadcast %30 : vector<1x128xf32> to vector<8x128xf32>
      %c0_30 = arith.constant 0 : index
      %c0_31 = arith.constant 0 : index
      %32 = vector.load %arg5[%c0_30, %c0_31] : memref<8x128xf32, #tpu.memory_space<vmem>>, vector<8x128xf32>
      tpu.vector_store %arg5[%c0_30, %c0_31], %31 {strides = array<i32>} : memref<8x128xf32, #tpu.memory_space<vmem>>, vector<8x128xf32>,
    } else {
    }
    %c0 = arith.constant 0 : index
    %c0_1 = arith.constant 0 : index
    %c0_2 = arith.constant 0 : index
    %3 = vector.load %arg2[%c0, %c0_1, %c0_2] : memref<4x8x16xf32, #tpu.memory_space<vmem>>, vector<1x8x16xf32>
    %4 = vector.shape_cast %3 : vector<1x8x16xf32> to vector<8x16xf32>
    %c0_3 = arith.constant 0 : index
    %c0_4 = arith.constant 0 : index
    %c0_5 = arith.constant 0 : index
    %5 = vector.load %arg3[%c0_3, %c0_4, %c0_5] : memref<4x16x128xf32, #tpu.memory_space<vmem>>, vector<1x16x128xf32>
    %6 = vector.shape_cast %5 : vector<1x16x128xf32> to vector<16x128xf32>
    %cst = arith.constant dense<0.000000e+00> : vector<8x128xf32>
    %7 = tpu.matmul %4, %6, %cst {dimension_numbers = #tpu.dot_dimension_numbers<[1], [0], [0], [1], [0, 0, 1, 1], [], []>} : vector<8x16xf32>, vector<16x128xf32>, vector<8x128xf32> -> vector<8x128xf32>
    %c1 = arith.constant 1 : index
    %c0_6 = arith.constant 0 : index
    %c0_7 = arith.constant 0 : index
    %8 = vector.load %arg2[%c1, %c0_6, %c0_7] : memref<4x8x16xf32, #tpu.memory_space<vmem>>, vector<1x8x16xf32>
    %9 = vector.shape_cast %8 : vector<1x8x16xf32> to vector<8x16xf32>
    %c1_8 = arith.constant 1 : index
    %c0_9 = arith.constant 0 : index
    %c0_10 = arith.constant 0 : index
    %10 = vector.load %arg3[%c1_8, %c0_9, %c0_10] : memref<4x16x128xf32, #tpu.memory_space<vmem>>, vector<1x16x128xf32>
    %11 = vector.shape_cast %10 : vector<1x16x128xf32> to vector<16x128xf32>
    %cst_11 = arith.constant dense<0.000000e+00> : vector<8x128xf32>
    %12 = tpu.matmul %9, %11, %cst_11 {dimension_numbers = #tpu.dot_dimension_numbers<[1], [0], [0], [1], [0, 0, 1, 1], [], []>} : vector<8x16xf32>, vector<16x128xf32>, vector<8x128xf32> -> vector<8x128xf32>
    %13 = arith.addf %7, %12 : vector<8x128xf32>
    %c2 = arith.constant 2 : index
    %c0_12 = arith.constant 0 : index
    %c0_13 = arith.constant 0 : index
    %14 = vector.load %arg2[%c2, %c0_12, %c0_13] : memref<4x8x16xf32, #tpu.memory_space<vmem>>, vector<1x8x16xf32>
    %15 = vector.shape_cast %14 : vector<1x8x16xf32> to vector<8x16xf32>
    %c2_14 = arith.constant 2 : index
    %c0_15 = arith.constant 0 : index
    %c0_16 = arith.constant 0 : index
    %16 = vector.load %arg3[%c2_14, %c0_15, %c0_16] : memref<4x16x128xf32, #tpu.memory_space<vmem>>, vector<1x16x128xf32>
    %17 = vector.shape_cast %16 : vector<1x16x128xf32> to vector<16x128xf32>
    %cst_17 = arith.constant dense<0.000000e+00> : vector<8x128xf32>
    %18 = tpu.matmul %15, %17, %cst_17 {dimension_numbers = #tpu.dot_dimension_numbers<[1], [0], [0], [1], [0, 0, 1, 1], [], []>} : vector<8x16xf32>, vector<16x128xf32>, vector<8x128xf32> -> vector<8x128xf32>
    %19 = arith.addf %13, %18 : vector<8x128xf32>
    %c3 = arith.constant 3 : index
    %c0_18 = arith.constant 0 : index
    %c0_19 = arith.constant 0 : index
    %20 = vector.load %arg2[%c3, %c0_18, %c0_19] : memref<4x8x16xf32, #tpu.memory_space<vmem>>, vector<1x8x16xf32>
    %21 = vector.shape_cast %20 : vector<1x8x16xf32> to vector<8x16xf32>
    %c3_20 = arith.constant 3 : index
    %c0_21 = arith.constant 0 : index
    %c0_22 = arith.constant 0 : index
    %22 = vector.load %arg3[%c3_20, %c0_21, %c0_22] : memref<4x16x128xf32, #tpu.memory_space<vmem>>, vector<1x16x128xf32>
    %23 = vector.shape_cast %22 : vector<1x16x128xf32> to vector<16x128xf32>
    %cst_23 = arith.constant dense<0.000000e+00> : vector<8x128xf32>
    %24 = tpu.matmul %21, %23, %cst_23 {dimension_numbers = #tpu.dot_dimension_numbers<[1], [0], [0], [1], [0, 0, 1, 1], [], []>} : vector<8x16xf32>, vector<16x128xf32>, vector<8x128xf32> -> vector<8x128xf32>
    %25 = arith.addf %19, %24 : vector<8x128xf32>
    %c0_24 = arith.constant 0 : index
    %c0_25 = arith.constant 0 : index
    %26 = vector.load %arg5[%c0_24, %c0_25] : memref<8x128xf32, #tpu.memory_space<vmem>>, vector<8x128xf32>
    %27 = arith.addf %26, %25 : vector<8x128xf32>
    %c0_26 = arith.constant 0 : index
    %c0_27 = arith.constant 0 : index
    %28 = vector.load %arg5[%c0_26, %c0_27] : memref<8x128xf32, #tpu.memory_space<vmem>>, vector<8x128xf32>
    tpu.vector_store %arg5[%c0_26, %c0_27], %27 {strides = array<i32>} : memref<8x128xf32, #tpu.memory_space<vmem>>, vector<8x128xf32>,
    return
  }
  func.func @transform_0(%arg0: i32, %arg1: i32) -> (i32, i32, i32) {
    %c0_i32 = arith.constant 0 : i32
    %c0_i32_0 = arith.constant 0 : i32
    return %arg1, %arg0, %c0_i32 : i32, i32, i32
  }
  func.func @transform_1(%arg0: i32, %arg1: i32) -> (i32, i32, i32) {
    %c0_i32 = arith.constant 0 : i32
    %c0_i32_0 = arith.constant 0 : i32
    %c0_i32_1 = arith.constant 0 : i32
    return %arg1, %c0_i32, %c0_i32_0 : i32, i32, i32
  }
  func.func @transform_2(%arg0: i32, %arg1: i32) -> (i32, i32) {
    %c0_i32 = arith.constant 0 : i32
    %c0_i32_0 = arith.constant 0 : i32
    %c0_i32_1 = arith.constant 0 : i32
    return %c0_i32, %c0_i32_0 : i32, i32
  }
  func.func @transform_3(%arg0: i32, %arg1: i32) -> (i32, i32) {
    %c0_i32 = arith.constant 0 : i32
    %c0_i32_0 = arith.constant 0 : i32
    return %arg0, %c0_i32 : i32, i32
  }
}

</mosaic_0001>

<bundles_post_ra>
// kernel: tpu_custom_call.1
= control target key start
LH: loop header
LB: loop body
LE: loop exit
PB: predicated region body
PF: predicated region fallthrough
CT: control target
= control target key end

     0   :  { %8 = vsyncpa [#allocation3], 0  ;;  %s1235_s0 = inlined_call_operand.hbm [shape: f32[4,16,16], index: 0, kind: input, shape index: {}]   ;;  %s1236_s1 = inlined_call_operand.hbm [shape: f32[4,16,128], index: 1, kind: input, shape index: {}]   ;;  %s1237_s2 = inlined_call_operand.vmem [shape: f32[1,128], index: 2, kind: input, shape index: {}]   ;;  %s1238_s3 = inlined_call_operand.hbm [shape: f32[16,128], index: 3, kind: output, shape index: {}]  }
   0x1   :  { %10 = vsyncpa [#allocation3 + $0x1], 0 }
   0x2   :  { %11 = vsyncpa [#allocation6], 0 }
   0x3   :  { %12 = vsyncpa [#allocation4], 0 }
   0x4   :  { %14 = vsyncpa [#allocation4 + $0x1], 0  ;;  %s994_s12 = smov 0   ;;  %s996_s13 = smov 0  }
   0x5   :  { %s998_s14 = smov 0   ;;  %s1000_s15 = smov 0  }
   0x6   :  { %s1002_s16 = smov 0   ;;  %s1004_s17 = smov 0  }
   0x7 LB: > { %s665_s18 = sadd.s32 4294967295, %s963_s17   ;;  %s666_s19 = sadd.s32 4294967294, %s963_s17   ;;  %s963_s17 = sphi %s1004_s17, %s20_s17   ;;  %s959_s16 = sphi %s1002_s16, %s1266_s16   ;;  %s955_s15 = sphi %s1000_s15, %s1265_s15   ;;  %s951_s14 = sphi %s998_s14, %s1264_s14   ;;  %s947_s13 = sphi %s996_s13, %s1263_s13   ;;  %s943_s12 = sphi %s994_s12, %s1262_s12  }
   0x8   : > { %p48_p0 = scmp.ne.s32.totalorder %s951_s14, %s947_s13  ;;  %p49_p1 = scmp.eq.s32.totalorder %s963_s17, 0 }
   0x9   : > { %p54_p2 = scmp.ne.s32.totalorder %s947_s13, %s943_s12  ;;  %p1031_p3 = scmp.eq.s32.totalorder %s665_s18, 0 }
   0xa   : > { %p1035_p4 = por %p49_p1, %p48_p0  ;;  %p125_p5 = scmp.eq.s32.totalorder %s665_s18, 1 }
   0xb   : > { %s1246_s20 = scalar_select %p1031_p3, 1, 0 }
   0xc   : > { %p1041_p6 = por %p1031_p3, %p54_p2  ;;  %p131_p7 = scmp.eq.s32.totalorder %s666_s19, 1 }
   0xd   : > { %p1045_p8 = por %p125_p5, %p48_p0  ;;  %p667_p9 = scmp.ge.s32.totalorder %s963_s17, 1 }
   0xe   : > { %s1248_s22 = scalar_select %p1041_p6, 1, 0 }
   0xf   : > { %s1249_s23 = scalar_select %p1045_p8, 1, 0 }
  0x10   : > { %p1050_p10 = por %p131_p7, %p54_p2  ;;  %p138_p11 = scmp.lt.s32.totalorder %s963_s17, 3 }
  0x11   : > { %s965_s26 = smov [#allocation5]   ;;  %p761_p1 = scmp.lt.s32.totalorder %s963_s17, 2 }
  0x12   : > { %s1250_s24 = scalar_select %p1050_p10, 1, 0 }
  0x13   : > { %p1055_p12 = pnand %p667_p9, %p138_p11  ;;  %s154_s27 = sshll.u32 %s965_s26, 4  ;;  %s1059_s27 = int_to_ptr.vmem [resolvable:$true] %s154_s27 }
  0x14   : > { %p1073_p2 = pnand %p761_p1, %p1035_p4  ;;  %s32_s30 = sadd.s32 1, %s959_s16 }
  0x15   : > { %s1251_s25 = scalar_select %p1055_p12, 1, 0 }
  0x16   : > { %p748_p13 = pneg %p1055_p12  ;;  %s819_s6 = scalar_lea.hbm %s1236_s1, 1024 }
  0x17   : > { %s1253_s29 = scalar_select %p1073_p2, 1, 0 }
  0x18   : > { %p1067_p5 = pnand %p748_p13, %p1031_p3  ;;  %p820_p7 = scmp.ne.s32.totalorder %s1236_s1, %s819_s6 }
  0x19   : > { %p826_p4 = scmp.lt.u32.totalorder %s819_s6, %s1236_s1 }
  0x1a   : > { %p821_p9 = pneg %p1067_p5 }
  0x1c   : > { %p822_p11 = pnand %p821_p9, %p820_p7 }
  0x1e   : > { %p823_p13 = pneg %p822_p11 }
  0x20   : > { %p828_p1 = pnand %p826_p4, %p823_p13 }
  0x22   : > { %831 = shalt.err (!%p828_p1)
}
  0x23   : > { %s832_s11 = scalar_lea.vmem %s1059_s27, 1024  ;;  %p840_p3 = scmp.lt.s32.totalorder %s1059_s27, %s1059_s27 }
  0x24   : > { %p833_p0 = scmp.ne.s32.totalorder %s1059_s27, %s832_s11  ;;  %p841_p6 = scmp.lt.s32.totalorder %s832_s11, %s832_s11 }
  0x26   : > { %p835_p10 = pnand %p833_p0, %p821_p9  ;;  %p842_p12 = por %p841_p6, %p840_p3 }
  0x28   : > { %p836_p8 = pneg %p835_p10 }
  0x2a   : > { %p843_p2 = pnand %p842_p12, %p836_p8 }
  0x2c   : > { %846 = shalt.err (!%p843_p2)
}
  0x2d   : > { %s1245_s18 = smov 128   ;;  %s967_s19 = smov 8  }
  0x2e   : > { %751 = dma.hbm_to_vmem [thread:$0]  (!%p1067_p5), %s1236_s1, 1024, %s1059_s27, [#allocation6], %s1245_s18, %s1245_s18, %s967_s19  }
  0x2f   : > { %p34_p3 = scmp.ge.s32.totalorder %s32_s30, 2  ;;  %s41_s4 = sadd.s32 1, %s951_s14 }
  0x30   : > { %s171_s5 = sand.u32 1, %s951_s14   ;;  %s671_s8 = sshll.u32 %s959_s16, 7 }
  0x31   : > { %s1268_s30 = smov (%p34_p3, %s32_s30), 0  ;;  %s670_s6 = sshll.u32 %s171_s5, 5 }
  0x32   : > { %s37_s7 = ssub.s32 %s959_s16, %s1268_s30  ;;  %s1112_s10 = scalar_lea.hbm %s1235_s0, %s671_s8 }
  0x33   : > { %p39_p6 = scmp.eq.s32.totalorder %s37_s7, 0  ;;  %s175_s27 = scalar_lea.vmem [#allocation2], %s670_s6 }
  0x34   : > { %s184_s11 = sshll.u32 %s175_s27, 4  ;;  %s1119_s26 = scalar_lea.sflag [#allocation3], %s171_s5  ;;  %s1117_s11 = int_to_ptr.vmem [resolvable:$true] %s184_s11 }
  0x35   : > { %s1115_s21 = scalar_select %p39_p6, %s951_s14, %s41_s4  }
  0x36   : > { %s847_s18 = scalar_lea.hbm %s1112_s10, 512  ;;  %p1254_p10 = scmp.ne.s32.totalorder %s1253_s29, 0 }
  0x37   : > { %p848_p8 = scmp.ne.s32.totalorder %s1112_s10, %s847_s18  ;;  %s852_s28 = scalar_lea.hbm %s1235_s0, 1024 }
  0x38   : > { %p849_p12 = pneg %p1254_p10  ;;  %p853_p2 = scmp.lt.u32.totalorder %s1112_s10, %s1235_s0 }
  0x39   : > { %p854_p7 = scmp.lt.u32.totalorder %s852_s28, %s847_s18  ;;  %p856_p11 = scmp.lt.u32.totalorder %s847_s18, %s1112_s10 }
  0x3a   : > { %p850_p0 = pnand %p849_p12, %p848_p8 }
  0x3b   : > { %p855_p9 = por %p854_p7, %p853_p2 }
  0x3c   : > { %p851_p5 = pneg %p850_p0 }
  0x3d   : > { %p857_p13 = por %p856_p11, %p855_p9 }
  0x3f   : > { %p858_p4 = pnand %p857_p13, %p851_p5 }
  0x41   : > { %861 = shalt.err (!%p858_p4)
}
  0x42   : > { %s862_s4 = scalar_lea.vmem %s1117_s11, 512  ;;  %s968_s5 = smov [#allocation2]  }
  0x43   : > { %p863_p1 = scmp.ne.s32.totalorder %s1117_s11, %s862_s4  ;;  %s867_s27 = sshll.u32 %s968_s5, 4  ;;  %s868_s27 = int_to_ptr.vmem [resolvable:$false] %s867_s27 }
  0x44   : > { %s869_s7 = scalar_lea.vmem %s868_s27, 1024  ;;  %p870_p8 = scmp.lt.s32.totalorder %s1117_s11, %s868_s27 }
  0x45   : > { %p865_p3 = pnand %p863_p1, %p849_p12  ;;  %p871_p0 = scmp.lt.s32.totalorder %s869_s7, %s862_s4 }
  0x47   : > { %p866_p6 = pneg %p865_p3  ;;  %p872_p2 = por %p871_p0, %p870_p8 }
  0x49   : > { %p873_p7 = pnand %p872_p2, %p866_p6 }
  0x4b   : > { %876 = shalt.err (!%p873_p7)
}
  0x4c   : > { %s969_s18 = smov 256   ;;  %s1255_s8 = smov 128  }
  0x4d   : > { %755 = dma.hbm_to_vmem [thread:$0]  (!%p1254_p10), %s1112_s10, 512, %s1117_s11, %s1119_s26, %s969_s18, %s1255_s8, %s967_s19  }
  0x4e   : > { %p1256_p12 = scmp.ne.s32.totalorder %s1251_s25, 0 }
  0x4f   : > { %s1152_s28 = sand.u32 (!%p1256_p12), 1, %s947_s13   ;;  %p1257_p5 = scmp.ne.s32.totalorder (!%p1256_p12), %s1248_s22, 0 }
  0x50   : > { %196 = sbr.rel (%p1256_p12) target bundleno = 334 (0x14e), region = 32  ;;  %s673_s6 = sshll.u32 (!%p1256_p12), %s1152_s28, 5 }
  0x51   : > { %s199_s9 = scalar_lea.sflag (!%p1256_p12), [#allocation3], %s1152_s28  ;;  %s1156_s4 = scalar_lea.vmem (!%p1256_p12), [#allocation2], %s673_s6 }
  0x57   : > { %930 = dma.done.wait (%p1257_p5), %s199_s9, 512  }
  0x58   : > { %932 = vsyncadd (%p1257_p5), %s199_s9, 4294966784  ;;  %p1258_p10 = scmp.ne.s32.totalorder %s1246_s20, 0 }
  0x5a   : > { %934 = dma.done.wait (%p1258_p10), [#allocation6], 1024  }
  0x5b   : > { %936 = vsyncadd (%p1258_p10), [#allocation6], 4294966272  ;;  %v970_v0 = vmov 0.0|0.0   ;;  %vm971_vm0 = vmmov 0   ;;  %v972_v1 = vmov 0.0   ;;  %v249_v2 = vld [vmem:[#allocation5 + $0x10] sm:$0xff] }
  0x5c   : > { %728 = vmatprep.subr.bf16.mxu0 %v970_v0  ;;  %731 = vmatprep.subr.bf16.mxu1 %v970_v0  ;;  %v250_v3 = vld [vmem:[#allocation5 + $0x18] sm:$0xff]  ;;  %v244_v4 = vld [vmem:[#allocation5] sm:$0xff]  ;;  %v245_v6 = vld [vmem:[#allocation5 + $0x8] sm:$0xff]  ;;  %vm251_vm1 = vcmask 130048   ;;  %s675_s20 = sshll.u32 %s1152_s28, 3  ;;  %s685_s29 = sshll.u32 %s955_s15, 7 }
  0x5d   : > { %704 = vmatprep.mubr.msk.f32.mxu0 %vm971_vm0, %v972_v1  ;;  %711 = vmatprep.mubr.msk.f32.mxu1 %vm971_vm0, %v972_v1  ;;  %v729_v5 = vpack.c.bf16 %v250_v3, %v249_v2  ;;  %v732_v7 = vpack.c.bf16 %v245_v6, %v244_v4  ;;  %v401_v8 = vld [vmem:[#allocation5 + $0x20] sm:$0xff]  ;;  %v402_v9 = vld [vmem:[#allocation5 + $0x28] sm:$0xff]  ;;  %v480_v10 = vld [vmem:[#allocation5 + $0x30] sm:$0xff]  ;;  %s228_s19 = scalar_lea.vmem [#allocation7], %s675_s20  ;;  %s1186_s5 = scalar_lea.hbm %s1238_s3, %s685_s29 }
  0x5e   : > { %v677_v11 = vld [vmem:[%s1156_s4 + $0x8] sm:$0xff]  ;;  %v735_v12 = vpack.c.bf16 %v402_v9, %v401_v8  ;;  %v481_v13 = vld [vmem:[#allocation5 + $0x38] sm:$0xff]  ;;  %v243_v14 = vld [vmem:[%s1156_s4] sm:$0xff]  ;;  %s573_s10 = sshll.u32 %s228_s19, 4  ;;  %s560_s27 = scalar_lea.sflag [#allocation4], %s1152_s28  ;;  %s1188_s10 = int_to_ptr.vmem [resolvable:$true] %s573_s10 }
  0x5f   : > { %730 = vmatpush3.bf16.msra.mxu0 %v729_v5  ;;  %733 = vmatpush3.bf16.msra.mxu1 %v732_v7  ;;  %v738_v15 = vpack.c.bf16 %v481_v13, %v480_v10  ;;  %v680_v16 = vld [vmem:[%s1156_s4 + $0x10] sm:$0xff]  ;;  %v682_v17 = vld [vmem:[%s1156_s4 + $0x18] sm:$0xff]  ;;  %v676_v27 = vld [vmem:[%s1237_s2] ss:$0 sm:$0xff]  ;;  %s877_s7 = scalar_lea.vmem %s1188_s10, 128  ;;  %p1259_p11 = scmp.ne.s32.totalorder %s1249_s23, 0 }
  0x60   : > { %734 = vmatprep.subr.bf16.mxu0 %v970_v0  ;;  %737 = vmatprep.subr.bf16.mxu1 %v970_v0  ;;  %p878_p9 = scmp.ne.s32.totalorder %s1188_s10, %s877_s7  ;;  %s973_s15 = smov [#allocation7]  }
  0x61   : > { %s881_s18 = sshll.u32 %s973_s15, 4  ;;  %s882_s18 = int_to_ptr.vmem [resolvable:$false] %s881_s18 }
  0x62   : > { %705 = vmatmul.mubr.msk.f32.vlgmr.msra.gmra.mrb[0].mxu0 %vm251_vm1, %v677_v11  ;;  %712 = vmatmul.mubr.msk.f32.vlgmr.msra.gmra.mrb[0].mxu1 %vm251_vm1, %v243_v14  ;;  %p879_p13 = pnand %p878_p9, %p1259_p11  ;;  %s883_s8 = scalar_lea.vmem %s882_s18, 256 }
  0x63   : > { %736 = vmatpush3.bf16.msra.mxu0 %v735_v12  ;;  %718 = vmatprep.mubr.msk.f32.mxu0 %vm971_vm0, %v972_v1  ;;  %p884_p1 = scmp.lt.s32.totalorder %s1188_s10, %s882_s18  ;;  %p885_p3 = scmp.lt.s32.totalorder %s883_s8, %s877_s7 }
  0x64   : > { %739 = vmatpush3.bf16.msra.mxu1 %v738_v15  ;;  %725 = vmatprep.mubr.msk.f32.mxu1 %vm971_vm0, %v972_v1  ;;  %p880_p4 = pneg %p879_p13 }
  0x65   : > { %p886_p6 = por %p885_p3, %p884_p1 }
  0x66   : > { %719 = vmatmul.mubr.msk.f32.vlgmr.msra.gmra.mrb[2].mxu0 %vm251_vm1, %v680_v16 }
  0x67   : > { %726 = vmatmul.mubr.msk.f32.vlgmr.msra.gmra.mrb[2].mxu1 %vm251_vm1, %v682_v17  ;;  %p887_p8 = pnand %p886_p6, %p880_p4 }
 0x135   : > { %v321_v18 = vpop.f32.mrb[0].mxu0  ;;  %v394_v20 = vpop.f32.mrb[0].mxu1 }
 0x136   : > { %v706_v19 = vpop.f32.mrb[1].mxu0  ;;  %v395_v21 = vadd.f32 %v394_v20, %v321_v18  ;;  %v713_v22 = vpop.f32.mrb[1].mxu1 }
 0x139   : > { %v472_v23 = vpop.f32.mrb[2].mxu0 }
 0x13a   : > { %v476_v24 = vadd.f32 %v472_v23, %v395_v21  ;;  %v720_v25 = vpop.f32.mrb[3].mxu0  ;;  %v551_v26 = vpop.f32.mrb[2].mxu1 }
 0x13b   : > { %v727_v28 = vpop.f32.mrb[3].mxu1 }
 0x13c   : > { %v555_v29 = vadd.f32 %v551_v26, %v476_v24 }
 0x13e   : > { %v557_v30 = vadd.f32 %v676_v27, %v555_v29 }
 0x140   : > { %558 = vst [vmem:[%s228_s19] sm:$0xff] %v557_v30 }
 0x141   : > { %890 = shalt.err (!%p887_p8)
}
 0x142   : > { %s891_s28 = scalar_lea.hbm %s1186_s5, 128  ;;  %s895_s4 = scalar_lea.hbm %s1238_s3, 256 }
 0x143   : > { %p892_p0 = scmp.ne.s32.totalorder %s1186_s5, %s891_s28  ;;  %p896_p12 = scmp.lt.u32.totalorder %s1186_s5, %s1238_s3 }
 0x144   : > { %p897_p5 = scmp.lt.u32.totalorder %s895_s4, %s891_s28  ;;  %p899_p9 = scmp.lt.u32.totalorder %s891_s28, %s1186_s5 }
 0x145   : > { %p893_p2 = pnand %p892_p0, %p1259_p11 }
 0x146   : > { %p898_p10 = por %p897_p5, %p896_p12 }
 0x147   : > { %p894_p7 = pneg %p893_p2 }
 0x148   : > { %p900_p13 = por %p899_p9, %p898_p10 }
 0x14a   : > { %p901_p4 = pnand %p900_p13, %p894_p7 }
 0x14c   : > { %904 = shalt.err (!%p901_p4)
}
 0x14d   : > { %746 = dma.vmem_to_hbm [thread:$0]  (%p1259_p11), %s1188_s10, 128, %s1186_s5, %s560_s27  }
 0x14e PF: > { %s585_s25 = sand.u32 1, %s943_s12   ;;  %p1260_p1 = scmp.ne.s32.totalorder %s1250_s24, 0 }
 0x14f   : > { %p1261_p3 = scmp.ge.s32.totalorder %s963_s17, 2  ;;  %s586_s29 = scalar_lea.sflag [#allocation4], %s585_s25 }
 0x151   : > { %p757_p6 = pnand %p1261_p3, %p1260_p1 }
 0x153   : > { %938 = dma.done.wait (!%p757_p6), %s586_s29, 128  }
 0x154   : > { %940 = vsyncadd (!%p757_p6), %s586_s29, 4294967168  ;;  %s20_s17 = sadd.s32 1, %s963_s17   ;;  %s1262_s12 = smov %s947_s13 }
 0x155   : > { %p17_p8 = scmp.ge.s32.totalorder %s20_s17, 4   ;;  %s1263_s13 = smov %s951_s14 }
 0x156   : > { %s1264_s14 = smov %s1115_s21  ;;  %s1265_s15 = smov %s959_s16 }
 0x157   : > { %s1266_s16 = smov %s1268_s30  ;;  %19 = sbr.rel (!%p17_p8) target bundleno = 7 (0x7), region = 92 }
 0x15e   :  { %591 = vsyncpa [#allocation3], 1 }
 0x15f   :  { %593 = vsyncpa [#allocation3 + $0x1], 1 }
 0x160   :  { %594 = vsyncpa [#allocation6], 1 }
 0x161   :  { %595 = vsyncpa [#allocation4], 1 }
 0x162   :  { %597 = vsyncpa [#allocation4 + $0x1], 1 }

</bundles_post_ra>
